<compile_context>
chip_gen: v6e
topology: v6e:2x2x1
jax: 0.10.0
libtpu: 0.0.40
codegen_flags: <defaults>
</compile_context>

<pallas_src>
import jax
import jax.numpy as jnp
from jax import lax
from jax.experimental import pallas as pl
from jax.experimental.pallas import tpu as pltpu


# ----------------------------------------------------------------------------
# Kernel
# ----------------------------------------------------------------------------
def _fcu_up_kernel(x_ref, wt_ref, shift_ref, o_ref):
    # x_ref:     (TM, C_in)     input dtype (cast to compute dtype in-kernel)
    # wt_ref:    (C_sub, C_in)  compute dtype, BN scale pre-folded per row
    # shift_ref: (C_sub, 1)     f32 folded shift (conv bias + BN shift)
    # o_ref:     (C_sub, TM)    compute dtype; lane axis = pixels (dense stores)
    xv = x_ref[...].astype(wt_ref.dtype)
    # (C_sub, C_in) . (TM, C_in) contracted on the last dims -> (C_sub, TM).
    y = lax.dot_general(
        wt_ref[...], xv,
        dimension_numbers=(((1,), (1,)), ((), ())),
        preferred_element_type=jnp.float32)
    y = y + shift_ref[...]
    o_ref[...] = jnp.maximum(y, 0.0).astype(o_ref.dtype)


# ----------------------------------------------------------------------------
# Tiling / VMEM helpers
# ----------------------------------------------------------------------------
def _round_up(x, m):
    return -(-x // m) * m


def _sublane_pack(itemsize):
    # Rows per native sublane tile: f32 -> 8, bf16 -> 16, int8/fp8 -> 32.
    return max(8, 32 // itemsize)


def _tile_bytes(rows, cols, itemsize):
    """Actual VMEM footprint of a (rows, cols) buffer: lanes pad to 128,
    rows pad to the dtype's sublane packing."""
    return (_round_up(rows, _sublane_pack(itemsize))
            * _round_up(cols, 128) * itemsize)


def _vmem_footprint(tm, c_in, c_sub, x_isz, w_isz, o_isz):
    """Double-buffered VMEM footprint of one grid step."""
    return (2 * _tile_bytes(tm, c_in, x_isz)        # x tile
            + 2 * _tile_bytes(c_sub, tm, o_isz)     # output tile
            + 2 * _tile_bytes(c_sub, c_in, w_isz)   # folded weight (constant)
            + 2 * _tile_bytes(c_sub, 1, 4))         # folded shift  (constant)


def _vmem_limit_cap():
    """Generation-aware cap: ~100 MiB on 128-MiB parts (v5e/v6e), ~48 MiB on
    v7x (64 MiB physical per TC).  Never request the whole physical VMEM."""
    try:
        cap = int(pltpu.get_tpu_info().vmem_capacity_bytes)
    except Exception:
        cap = 64 << 20            # conservative default (v7x per-TensorCore)
    return int(min(cap - (16 << 20), 100 << 20))


def _choose_tm(m, vmem_budget, c_in, c_sub, x_isz, w_isz, o_isz):
    """Largest row tile (multiple of 128) that fits the VMEM budget, clamped
    to the actual work size, with >=2 grid steps guaranteed when there is
    enough work (v7x dual TensorCore / megacore sharding of the row axis)."""
    m_ceil = _round_up(max(m, 1), 128)
    tm = 128
    for cand in (8192, 4096, 2048, 1024, 512, 256, 128):
        if _vmem_footprint(cand, c_in, c_sub, x_isz, w_isz, o_isz) <= vmem_budget:
            tm = cand
            break
    tm = min(tm, m_ceil)                       # don't allocate pure padding
    if m_ceil <= tm and m >= 256:              # split so the grid has >=2 steps
        tm = max(128, _round_up(-(-m // 2), 128))
    return tm


# ----------------------------------------------------------------------------
# Wrapper (= FCUUp.forward(x, H, W))
# ----------------------------------------------------------------------------
def fcu_up(x, conv_w, conv_b, gamma, beta, run_mean, run_var,
           H, W, up_stride, eps=1e-6,
           compute_dtype=jnp.bfloat16, out_dtype=None):
    """Pallas implementation of FCUUp.forward(x, H, W).

    x:       (B, N, C_in) with N == H*W   (transformer tokens)
    conv_w:  (C_out, C_in, 1, 1)          (1x1 conv weight)
    returns: (B, C_out, H*up_stride, W*up_stride)   (NCHW, like PyTorch)
    """
    B, N, C_in = x.shape
    assert N == H * W, "sequence length must equal H*W"
    C_out = conv_w.shape[0]
    out_dtype = out_dtype or x.dtype

    # ---- parameter folding (one-time, tiny, f32) ---------------------------
    w2d = conv_w.reshape(C_out, C_in).astype(jnp.float32)             # (C_out, C_in)
    scale = gamma.astype(jnp.float32) / jnp.sqrt(
        run_var.astype(jnp.float32) + eps)                            # (C_out,)
    w_fold = w2d * scale[:, None]                                     # BN scale folded
    shift = ((conv_b.astype(jnp.float32) - run_mean.astype(jnp.float32)) * scale
             + beta.astype(jnp.float32))                              # (C_out,)

    # ---- output channels: sublane (8) rounding only, NO pad to 128 lanes ---
    C_sub = _round_up(C_out, 8)
    if C_sub != C_out:
        w_fold = jnp.pad(w_fold, ((0, C_sub - C_out), (0, 0)))
        shift = jnp.pad(shift, (0, C_sub - C_out))
    w_t = w_fold.astype(compute_dtype)                                # (C_sub, C_in)
    shift2d = shift.reshape(C_sub, 1)                                 # f32

    # ---- row flattening (no wrapper cast, no wrapper pad: no extra passes) -
    x2d = x.reshape(B * N, C_in)
    M = B * N

    x_isz = jnp.dtype(x.dtype).itemsize
    c_isz = jnp.dtype(compute_dtype).itemsize

    vmem_cap = _vmem_limit_cap()
    TM = _choose_tm(M, vmem_cap, C_in, C_sub, x_isz, c_isz, c_isz)
    n_tiles = pl.cdiv(M, TM)
    M_pad = n_tiles * TM                      # out fully tiled; x last block may
                                              # read past M (columns discarded)
    footprint = _vmem_footprint(TM, C_in, C_sub, x_isz, c_isz, c_isz)
    vmem_limit = int(min(vmem_cap, max(footprint + (4 << 20), 16 << 20)))

    cost = pl.CostEstimate(
        flops=2 * M_pad * C_in * C_sub,
        transcendentals=0,
        bytes_accessed=(M * C_in * x_isz + C_sub * C_in * c_isz
                        + C_sub * 4 + M_pad * C_sub * c_isz))

    out2d = pl.pallas_call(
        _fcu_up_kernel,
        out_shape=jax.ShapeDtypeStruct((C_sub, M_pad), compute_dtype),
        grid_spec=pltpu.PrefetchScalarGridSpec(
            num_scalar_prefetch=0,
            grid=(n_tiles,),
            in_specs=[
                pl.BlockSpec((TM, C_in), lambda i: (i, 0)),
                # Constant-index blocks: the pipeline dedups their DMA across
                # grid steps.  pl.Buffered(1) would halve their VMEM, but they
                # are KB-scale here, so keep default buffering for robustness.
                pl.BlockSpec((C_sub, C_in), lambda i: (0, 0)),
                pl.BlockSpec((C_sub, 1), lambda i: (0, 0)),
            ],
            out_specs=pl.BlockSpec((C_sub, TM), lambda i: (0, i)),
        ),
        compiler_params=pltpu.CompilerParams(
            dimension_semantics=("parallel",),
            vmem_limit_bytes=vmem_limit),
        cost_estimate=cost,
    )(x2d, w_t, shift2d)

    # ---- glue: (C, M) layout -> NCHW is a leading-axis permute that fuses
    #      with the nearest-neighbour upsample broadcast + final cast, so the
    #      big (up_stride^2 x) tensor is written exactly once. ----------------
    y = out2d[:C_out, :M].reshape(C_out, B, H, W)
    y = jnp.transpose(y, (1, 0, 2, 3))                         # (B, C_out, H, W)
    y = jnp.broadcast_to(y[:, :, :, None, :, None],
                         (B, C_out, H, up_stride, W, up_stride))
    return y.reshape(B, C_out, H * up_stride, W * up_stride).astype(out_dtype)


# ----------------------------------------------------------------------------
# Pure-JAX f32 reference (mirrors the PyTorch forward, eval-mode BN)
# ----------------------------------------------------------------------------
def _reference(x, conv_w, conv_b, gamma, beta, run_mean, run_var,
               H, W, up_stride, eps=1e-6):
    B, N, C_in = x.shape
    C_out = conv_w.shape[0]
    x_r = jnp.transpose(x, (0, 2, 1)).reshape(B, C_in, H, W)          # NCHW
    w = conv_w.reshape(C_out, C_in)
    y = jnp.einsum("bchw,oc->bohw", x_r, w) + conv_b[None, :, None, None]
    y = (y - run_mean[None, :, None, None]) / jnp.sqrt(
        run_var[None, :, None, None] + eps)
    y = y * gamma[None, :, None, None] + beta[None, :, None, None]
    y = jnp.maximum(y, 0.0)
    y = jnp.repeat(y, up_stride, axis=2)
    y = jnp.repeat(y, up_stride, axis=3)
    return y


if __name__ == "__main__":
    # Small deterministic example: B=2, H=W=8 (N=64 tokens), inplanes=32,
    # outplanes=16, up_stride=2 (matches FCUUp usage inside ConvTransBlock).
    B, H, W = 2, 8, 8
    inplanes, outplanes, up_stride = 32, 16, 2
    N = H * W

    key = jax.random.PRNGKey(0)
    kx, kw, kb, kg, kbt = jax.random.split(key, 5)

    x = jax.random.normal(kx, (B, N, inplanes), dtype=jnp.float32)
    conv_w = jax.random.normal(kw, (outplanes, inplanes, 1, 1),
                               dtype=jnp.float32) * 0.1
    conv_b = jax.random.normal(kb, (outplanes,), dtype=jnp.float32) * 0.1
    gamma = 1.0 + 0.1 * jax.random.normal(kg, (outplanes,), dtype=jnp.float32)
    beta = 0.1 * jax.random.normal(kbt, (outplanes,), dtype=jnp.float32)
    run_mean = jnp.zeros((outplanes,), dtype=jnp.float32)   # BN default init
    run_var = jnp.ones((outplanes,), dtype=jnp.float32)

    ref = _reference(x, conv_w, conv_b, gamma, beta, run_mean, run_var,
                     H, W, up_stride)

    fcu_up_jit = jax.jit(
        fcu_up,
        static_argnames=("H", "W", "up_stride", "compute_dtype", "out_dtype"))

    # Fast path: bf16 MXU operands, f32 accumulation (default).
    out = fcu_up_jit(x, conv_w, conv_b, gamma, beta, run_mean, run_var,
                     H=H, W=W, up_stride=up_stride)
    out = jax.block_until_ready(out)
    assert out.shape == (B, outplanes, H * up_stride, W * up_stride), out.shape
    assert out.dtype == x.dtype, out.dtype
    assert jnp.allclose(out, ref, atol=3e-2, rtol=3e-2), \
        "bf16 path mismatch vs reference"

    # Exact path: f32 operands, tight check of semantics.
    out_f32 = fcu_up_jit(x, conv_w, conv_b, gamma, beta, run_mean, run_var,
                         H=H, W=W, up_stride=up_stride,
                         compute_dtype=jnp.float32)
    out_f32 = jax.block_until_ready(out_f32)
    assert jnp.allclose(out_f32, ref, atol=1e-4, rtol=1e-4), \
        "f32 path mismatch vs reference"

    print("KERNEL_OK")
</pallas_src>

<mosaic_0001>
module attributes {stable_mosaic.version = 11 : i64} {
  func.func @_fcu_up_kernel(%arg0: i32, %arg1: memref<128x32xf32, #tpu.memory_space<vmem>>, %arg2: memref<16x32xbf16, #tpu.memory_space<vmem>>, %arg3: memref<16x1xf32, #tpu.memory_space<vmem>>, %arg4: memref<16x128xbf16, #tpu.memory_space<vmem>>) attributes {dimension_semantics = [#tpu.dimension_semantics<parallel>], iteration_bounds = array<i64: 1>, scalar_prefetch = 0 : i64, scratch_operands = 0 : i64, tpu.core_type = #tpu.core_type<tc>, window_params = [{transform_indices = @transform_0, window_bounds = array<i64: 128, 32>}, {pipeline_mode = #tpu.pipeline_mode<synchronous>, transform_indices = @transform_1, window_bounds = array<i64: 16, 32>}, {pipeline_mode = #tpu.pipeline_mode<synchronous>, transform_indices = @transform_2, window_bounds = array<i64: 16, 1>}, {transform_indices = @transform_3, window_bounds = array<i64: 16, 128>}]} {
    %c0 = arith.constant 0 : index
    %c0_0 = arith.constant 0 : index
    %0 = vector.load %arg1[%c0, %c0_0] : memref<128x32xf32, #tpu.memory_space<vmem>>, vector<128x32xf32>
    %1 = arith.truncf %0 : vector<128x32xf32> to vector<128x32xbf16>
    %c0_1 = arith.constant 0 : index
    %c0_2 = arith.constant 0 : index
    %2 = vector.load %arg2[%c0_1, %c0_2] : memref<16x32xbf16, #tpu.memory_space<vmem>>, vector<16x32xbf16>
    %cst = arith.constant dense<0.000000e+00> : vector<16x128xf32>
    %3 = tpu.matmul %2, %1, %cst {dimension_numbers = #tpu.dot_dimension_numbers<[1], [1], [0], [0], [0, 0, 1, 0], [], []>} : vector<16x32xbf16>, vector<128x32xbf16>, vector<16x128xf32> -> vector<16x128xf32>
    %c0_3 = arith.constant 0 : index
    %c0_4 = arith.constant 0 : index
    %4 = vector.load %arg3[%c0_3, %c0_4] : memref<16x1xf32, #tpu.memory_space<vmem>>, vector<16x1xf32>
    %5 = vector.broadcast %4 : vector<16x1xf32> to vector<16x128xf32>
    %6 = arith.addf %3, %5 : vector<16x128xf32>
    %cst_5 = arith.constant 0.000000e+00 : f32
    %7 = vector.broadcast %cst_5 : f32 to vector<16x128xf32>
    %8 = arith.maximumf %6, %7 : vector<16x128xf32>
    %9 = arith.truncf %8 : vector<16x128xf32> to vector<16x128xbf16>
    %c0_6 = arith.constant 0 : index
    %c0_7 = arith.constant 0 : index
    %10 = vector.load %arg4[%c0_6, %c0_7] : memref<16x128xbf16, #tpu.memory_space<vmem>>, vector<16x128xbf16>
    tpu.vector_store %arg4[%c0_6, %c0_7], %9 {strides = array<i32>} : memref<16x128xbf16, #tpu.memory_space<vmem>>, vector<16x128xbf16>,
    return
  }
  func.func @transform_0(%arg0: i32) -> (i32, i32) {
    %c0_i32 = arith.constant 0 : i32
    %c0_i32_0 = arith.constant 0 : i32
    return %arg0, %c0_i32 : i32, i32
  }
  func.func @transform_1(%arg0: i32) -> (i32, i32) {
    %c0_i32 = arith.constant 0 : i32
    %c0_i32_0 = arith.constant 0 : i32
    %c0_i32_1 = arith.constant 0 : i32
    return %c0_i32, %c0_i32_0 : i32, i32
  }
  func.func @transform_2(%arg0: i32) -> (i32, i32) {
    %c0_i32 = arith.constant 0 : i32
    %c0_i32_0 = arith.constant 0 : i32
    %c0_i32_1 = arith.constant 0 : i32
    return %c0_i32, %c0_i32_0 : i32, i32
  }
  func.func @transform_3(%arg0: i32) -> (i32, i32) {
    %c0_i32 = arith.constant 0 : i32
    %c0_i32_0 = arith.constant 0 : i32
    return %c0_i32, %arg0 : i32, i32
  }
}

</mosaic_0001>

<bundles_post_ra>
// kernel: fcu_up.1
= control target key start
LH: loop header
LB: loop body
LE: loop exit
PB: predicated region body
PF: predicated region fallthrough
CT: control target
= control target key end

     0   :  { %v188_v0 = vmov 0.0   ;;  %vm58_vm0 = vcmask 261120   ;;  %vm189_vm1 = vmmov 0   ;;  %v190_v4 = vmov 0   ;;  %s280_s0 = inlined_call_operand.vmem [shape: f32[128,32], index: 0, kind: input, shape index: {}]   ;;  %s281_s2 = inlined_call_operand.vmem [shape: f32[16,1], index: 2, kind: input, shape index: {}]   ;;  %s282_s1 = inlined_call_operand.vmem [shape: bf16[16,32], index: 1, kind: input, shape index: {}]   ;;  %s283_s3 = inlined_call_operand.vmem [shape: bf16[16,128], index: 3, kind: output, shape index: {}]  }
   0x1   :  { %163 = vmatprep.subr.bf16.mxu0 %v188_v0  ;;  %v29_v1 = vld [vmem:[%s280_s0 + $0x70] sm:$0xff]  ;;  %v30_v2 = vld [vmem:[%s280_s0 + $0x78] sm:$0xff]  ;;  %179 = vmatprep.mubr.msk.bf16.mxu0 %vm189_vm1, %v188_v0  ;;  %v27_v5 = vld [vmem:[%s280_s0 + $0x60] sm:$0xff] }
   0x2   :  { %v38_v3 = vpack.c.bf16 %v30_v2, %v29_v1  ;;  %186 = vset.pattern.permute.xlu0 %v190_v4  ;;  %v28_v6 = vld [vmem:[%s280_s0 + $0x68] sm:$0xff]  ;;  %v41_v9 = vld [vmem:[%s281_s2] sm:$0xff]  ;;  %v25_v12 = vld [vmem:[%s280_s0 + $0x50] sm:$0xff] }
   0x3   :  { %v37_v8 = vpack.c.bf16 %v28_v6, %v27_v5  ;;  %45 = vperm.xlu0 %186, %v41_v9   ;;  %v42_v10 = vld [vmem:[%s281_s2 + $0x8] sm:$0xff]  ;;  %v26_v13 = vld [vmem:[%s280_s0 + $0x58] sm:$0xff]  ;;  %v23_v16 = vld [vmem:[%s280_s0 + $0x40] sm:$0xff] }
   0x4   :  { %v84_v7 = vsel %vm58_vm0, %v38_v3, 0  ;;  %v36_v14 = vpack.c.bf16 %v26_v13, %v25_v12  ;;  %v24_v17 = vld [vmem:[%s280_s0 + $0x48] sm:$0xff]  ;;  %v21_v20 = vld [vmem:[%s280_s0 + $0x30] sm:$0xff]  ;;  %v22_v21 = vld [vmem:[%s280_s0 + $0x38] sm:$0xff] }
   0x5   :  { %164 = vmatpush3.bf16.xpose.msra.mxu0 %v84_v7  ;;  %v81_v11 = vsel %vm58_vm0, %v37_v8, 0  ;;  %v35_v18 = vpack.c.bf16 %v24_v17, %v23_v16  ;;  %v34_v22 = vpack.c.bf16 %v22_v21, %v21_v20  ;;  %v19_v24 = vld [vmem:[%s280_s0 + $0x20] sm:$0xff]  ;;  %v20_v25 = vld [vmem:[%s280_s0 + $0x28] sm:$0xff]  ;;  %v17_v28 = vld [vmem:[%s280_s0 + $0x10] sm:$0xff] }
   0x6   :  { %165 = vmatprep.subr.bf16.mxu0 %v188_v0  ;;  %v78_v15 = vsel %vm58_vm0, %v36_v14, 0  ;;  %v33_v26 = vpack.c.bf16 %v20_v25, %v19_v24  ;;  %v18_v29 = vld [vmem:[%s280_s0 + $0x18] sm:$0xff]  ;;  %v15_v32 = vld [vmem:[%s280_s0] sm:$0xff]  ;;  %v16_v33 = vld [vmem:[%s280_s0 + $0x8] sm:$0xff] }
   0x7   :  { %50 = vperm.xlu0 %186, %v42_v10   ;;  %v75_v19 = vsel %vm58_vm0, %v35_v18, 0  ;;  %v72_v23 = vsel %vm58_vm0, %v34_v22, 0  ;;  %v32_v30 = vpack.c.bf16 %v18_v29, %v17_v28  ;;  %v31_v34 = vpack.c.bf16 %v16_v33, %v15_v32  ;;  %v187_v36 = vld [vmem:[%s282_s1] sm:$0xff]  }
   0x8   :  { %v69_v27 = vsel %vm58_vm0, %v33_v26, 0 }
   0x9   :  { %v66_v31 = vsel %vm58_vm0, %v32_v30, 0  ;;  %v63_v35 = vsel %vm58_vm0, %v31_v34, 0 }
   0xd   :  { %166 = vmatpush3.bf16.xpose.msra.mxu0 %v81_v11 }
   0xe   :  { %167 = vmatprep.subr.bf16.mxu0 %v188_v0 }
  0x15   :  { %168 = vmatpush3.bf16.xpose.msra.mxu0 %v78_v15 }
  0x16   :  { %169 = vmatprep.subr.bf16.mxu0 %v188_v0 }
  0x1d   :  { %170 = vmatpush3.bf16.xpose.msra.mxu0 %v75_v19 }
  0x1e   :  { %171 = vmatprep.subr.bf16.mxu0 %v188_v0 }
  0x25   :  { %172 = vmatpush3.bf16.xpose.msra.mxu0 %v72_v23 }
  0x26   :  { %173 = vmatprep.subr.bf16.mxu0 %v188_v0 }
  0x2d   :  { %174 = vmatpush3.bf16.xpose.msra.mxu0 %v69_v27 }
  0x2e   :  { %175 = vmatprep.subr.bf16.mxu0 %v188_v0 }
  0x35   :  { %176 = vmatpush3.bf16.xpose.msra.mxu0 %v66_v31 }
  0x36   :  { %177 = vmatprep.subr.bf16.mxu0 %v188_v0 }
  0x3d   :  { %178 = vmatpush3.bf16.xpose.msra.mxu0 %v63_v35 }
  0x44   :  { %180 = vmatmul.mubr.msk.bf16.vlgmr.msra.gmra.mxu0 %vm58_vm0, %v187_v36 }
  0x7e   :  { %v46_v37 = vpop.permute.xlu0 %45 }
  0x82   :  { %v51_v41 = vpop.permute.xlu0 %50 }
 0x104   :  { %v120_v38 = vpop.f32.mrf.mxu0 }
 0x105   :  { %v121_v40 = vadd.f32 %v120_v38, %v46_v37 }
 0x106   :  { %v181_v39 = vpop.f32.mrf.mxu0 }
 0x107   :  { %v127_v45 = vmax.f32 %v121_v40, 0.0 }
 0x108   :  { %v123_v42 = vpop.f32.mrf.mxu0 }
 0x109   :  { %v124_v43 = vadd.f32 %v123_v42, %v51_v41 }
 0x10a   :  { %v182_v44 = vpop.f32.mrf.mxu0 }
 0x10b   :  { %v128_v46 = vmax.f32 %v124_v43, 0.0 }
 0x10d   :  { %v152_v47 = vpack.c.bf16 %v128_v46, %v127_v45 }
 0x10f   :  { %153 = vst [vmem:[%s283_s3] sm:$0xff] %v152_v47  }

</bundles_post_ra>
